<compile_context>
chip_gen: v7x
topology: tpu7x:2x2x1
jax: 0.10.0
libtpu: 0.0.40
codegen_flags: <defaults>
</compile_context>

<pallas_src>
import math
from functools import partial

import jax
import jax.numpy as jnp
from jax.experimental import pallas as pl
from jax.experimental.pallas import tpu as pltpu

LANE = 128


def _round_up(x, m):
    return (x + m - 1) // m * m


def _select_batch_tile(B, block_b):
    """Batch tile: multiple of 8, <= block_b, and (for big batches) >=2 grid steps."""
    block_b = max(8, _round_up(block_b, 8))
    tb = min(block_b, _round_up(B, 8))
    # v7x has 2 TensorCores: keep at least 2 grid steps when the batch is large
    # enough that splitting it is worthwhile (>=256 rows per core).
    if B >= 512:
        tb = min(tb, _round_up(pl.cdiv(B, 2), 8))
    return max(tb, 8)


def critic_kernel(x_ref, w1_ref, b1_ref, w2_ref, b2_ref, w3_ref, b3_ref, o_ref):
    """One batch tile of the fused critic MLP.

    h1 = relu(x @ W1 + b1)      x is the lane-dense concat(state, action) tile
    h2 = relu(h1 @ W2 + b2)
    q  = h2 @ W3 + b3           W3 is (mid_pad, 128); cols 0/1 are the q1/q2 heads.

    Weights are bf16, dot inputs are cast to bf16; accumulation, bias and ReLU are f32.
    """
    x = x_ref[...].astype(jnp.bfloat16)

    h1 = jnp.dot(x, w1_ref[...], preferred_element_type=jnp.float32) + b1_ref[...]
    h1 = jnp.maximum(h1, 0.0).astype(jnp.bfloat16)

    h2 = jnp.dot(h1, w2_ref[...], preferred_element_type=jnp.float32) + b2_ref[...]
    h2 = jnp.maximum(h2, 0.0).astype(jnp.bfloat16)

    q = jnp.dot(h2, w3_ref[...], preferred_element_type=jnp.float32) + b3_ref[...]
    o_ref[...] = q.astype(o_ref.dtype)


def make_critic_params(key, state_dim, action_dim, mid_dim):
    """Build parameters.

    Returns (padded_params, raw_params):
      padded_params: weights pre-transposed to (in, out), zero-padded to 128 lanes,
                     stored in bf16 (biases f32); twin Q heads fused into one
                     (mid_pad, 128) final weight (col 0 = q1, col 1 = q2).
      raw_params:    unpadded f32 math-reference parameters.
    """
    in_dim = state_dim + action_dim
    in_pad = _round_up(in_dim, LANE)
    mid_pad = _round_up(mid_dim, LANE)

    k1w, k1b, k2w, k2b, kq1, kq2 = jax.random.split(key, 6)

    # nn.Linear default init (uniform +-1/sqrt(fan_in)) for the two hidden layers.
    bound1 = 1.0 / math.sqrt(in_dim)
    w1 = jax.random.uniform(k1w, (in_dim, mid_dim), jnp.float32, -bound1, bound1)
    b1 = jax.random.uniform(k1b, (mid_dim,), jnp.float32, -bound1, bound1)

    bound2 = 1.0 / math.sqrt(mid_dim)
    w2 = jax.random.uniform(k2w, (mid_dim, mid_dim), jnp.float32, -bound2, bound2)
    b2 = jax.random.uniform(k2b, (mid_dim,), jnp.float32, -bound2, bound2)

    # Twin Q heads: orthogonal init std=0.1, bias 1e-6 (matches layer_norm()).
    ortho = jax.nn.initializers.orthogonal(scale=0.1)
    wq1 = ortho(kq1, (mid_dim, 1), jnp.float32)
    wq2 = ortho(kq2, (mid_dim, 1), jnp.float32)
    bq = 1e-6

    # --- zero-pad to lane width (exact: padded rows/cols contribute 0, relu(0)=0) ---
    w1_p = jnp.zeros((in_pad, mid_pad), jnp.float32).at[:in_dim, :mid_dim].set(w1)
    b1_p = jnp.zeros((1, mid_pad), jnp.float32).at[0, :mid_dim].set(b1)
    w2_p = jnp.zeros((mid_pad, mid_pad), jnp.float32).at[:mid_dim, :mid_dim].set(w2)
    b2_p = jnp.zeros((1, mid_pad), jnp.float32).at[0, :mid_dim].set(b2)
    w3_p = (jnp.zeros((mid_pad, LANE), jnp.float32)
            .at[:mid_dim, 0].set(wq1[:, 0])
            .at[:mid_dim, 1].set(wq2[:, 0]))
    b3_p = jnp.zeros((1, LANE), jnp.float32).at[0, 0].set(bq).at[0, 1].set(bq)

    padded = (w1_p.astype(jnp.bfloat16), b1_p,
              w2_p.astype(jnp.bfloat16), b2_p,
              w3_p.astype(jnp.bfloat16), b3_p)
    raw = (w1, b1, w2, b2, wq1, wq2, bq)
    return padded, raw


def critic_q1_q2(padded_params, state, action, *, block_b=512):
    """Run the fused kernel; returns (q1, q2), each (B, 1) float32."""
    w1, b1, w2, b2, w3, b3 = padded_params
    B = state.shape[0]
    in_dim = state.shape[1] + action.shape[1]
    in_pad, mid_pad = w1.shape

    # Fold torch.cat into one lane-dense (B, in_pad) input: one dense DMA per batch
    # tile and a single K=in_pad MXU chain; padded columns hit zero weight rows.
    x = jnp.concatenate([state, action], axis=1)
    if in_pad != in_dim:
        x = jnp.pad(x, ((0, 0), (0, in_pad - in_dim)))

    tb = _select_batch_tile(B, block_b)
    grid_steps = pl.cdiv(B, tb)
    grid = (grid_steps,)

    def batch_spec(d):
        return pl.BlockSpec((tb, d), lambda i: (i, 0))

    def const_spec(r, c):
        # Weights/biases stay resident across grid steps. For big weight matrices,
        # single-buffer them so VMEM headroom goes to batch tiles instead.
        if mid_pad >= 512:
            return pl.BlockSpec((r, c), lambda i: (0, 0), pipeline_mode=pl.Buffered(1))
        return pl.BlockSpec((r, c), lambda i: (0, 0))

    padded_rows = grid_steps * tb
    flops = 2 * padded_rows * mid_pad * (in_pad + mid_pad + LANE)
    bytes_accessed = (4 * padded_rows * in_pad                      # x (f32 in)
                      + 4 * padded_rows * LANE                      # out (f32)
                      + 2 * ((in_pad + mid_pad) * mid_pad + mid_pad * LANE)  # bf16 weights
                      + 4 * (2 * mid_pad + LANE))                   # f32 biases

    out = pl.pallas_call(
        critic_kernel,
        out_shape=jax.ShapeDtypeStruct((B, LANE), jnp.float32),
        grid=grid,
        in_specs=[
            batch_spec(in_pad),               # x tile (lane-dense concat)
            const_spec(in_pad, mid_pad),      # W1 (resident, bf16)
            const_spec(1, mid_pad),           # b1
            const_spec(mid_pad, mid_pad),     # W2 (resident, bf16)
            const_spec(1, mid_pad),           # b2
            const_spec(mid_pad, LANE),        # W3 (fused q1/q2 heads, bf16)
            const_spec(1, LANE),              # b3
        ],
        out_specs=pl.BlockSpec((tb, LANE), lambda i: (i, 0)),
        compiler_params=pltpu.CompilerParams(
            dimension_semantics=("parallel",),
        ),
        cost_estimate=pl.CostEstimate(
            flops=flops, transcendentals=0, bytes_accessed=bytes_accessed),
    )(x, w1, b1, w2, b2, w3, b3)

    # Boundary tile rows (if B % tb != 0) are masked on write; out already has B rows.
    q1 = out[:, 0:1]
    q2 = out[:, 1:2]
    return q1, q2


def critic_forward(padded_params, state, action, *, block_b=512):
    """Matches CriticTwin.forward: returns q1 only, shape (B, 1)."""
    q1, _ = critic_q1_q2(padded_params, state, action, block_b=block_b)
    return q1


def reference_q1_q2(raw_params, state, action):
    w1, b1, w2, b2, wq1, wq2, bq = raw_params
    x = jnp.concatenate([state, action], axis=1)
    h1 = jnp.maximum(x @ w1 + b1, 0.0)
    h2 = jnp.maximum(h1 @ w2 + b2, 0.0)
    return h2 @ wq1 + bq, h2 @ wq2 + bq


if __name__ == "__main__":
    state_dim = 24
    action_dim = 8
    mid_dim = 32

    key = jax.random.PRNGKey(0)
    k_params, k_state, k_action = jax.random.split(key, 3)
    padded_params, raw_params = make_critic_params(k_params, state_dim, action_dim, mid_dim)

    # bf16 dot inputs -> compare against the f32 reference with a bf16-level tolerance.
    TOL = dict(atol=3e-2, rtol=3e-2)

    # --- test 1: small batch, single grid step ---
    batch = 8
    state = jax.random.normal(k_state, (batch, state_dim), jnp.float32)
    action = jax.random.normal(k_action, (batch, action_dim), jnp.float32)

    fwd = jax.jit(partial(critic_q1_q2, padded_params))
    q1, q2 = fwd(state, action)
    jax.block_until_ready((q1, q2))

    q1_ref, q2_ref = reference_q1_q2(raw_params, state, action)
    assert q1.shape == (batch, 1) and q2.shape == (batch, 1)
    assert jnp.allclose(q1, q1_ref, **TOL)
    assert jnp.allclose(q2, q2_ref, **TOL)

    qf = jax.jit(partial(critic_forward, padded_params))(state, action)
    jax.block_until_ready(qf)
    assert jnp.allclose(qf, q1_ref, **TOL)

    # --- test 2: multi-step grid with a masked boundary tile (no wrapper batch pad) ---
    batch2 = 44
    k_s2, k_a2 = jax.random.split(jax.random.PRNGKey(1), 2)
    state2 = jax.random.normal(k_s2, (batch2, state_dim), jnp.float32)
    action2 = jax.random.normal(k_a2, (batch2, action_dim), jnp.float32)

    q1b, q2b = jax.jit(partial(critic_q1_q2, padded_params, block_b=16))(state2, action2)
    jax.block_until_ready((q1b, q2b))
    q1b_ref, q2b_ref = reference_q1_q2(raw_params, state2, action2)
    assert q1b.shape == (batch2, 1) and q2b.shape == (batch2, 1)
    assert jnp.allclose(q1b, q1b_ref, **TOL)
    assert jnp.allclose(q2b, q2b_ref, **TOL)

    print("KERNEL_OK")
</pallas_src>

<mosaic_0001>
module attributes {stable_mosaic.version = 11 : i64} {
  func.func @critic_kernel(%arg0: i32, %arg1: memref<8x128xf32, #tpu.memory_space<vmem>>, %arg2: memref<128x128xbf16, #tpu.memory_space<vmem>>, %arg3: memref<1x128xf32, #tpu.memory_space<vmem>>, %arg4: memref<128x128xbf16, #tpu.memory_space<vmem>>, %arg5: memref<1x128xf32, #tpu.memory_space<vmem>>, %arg6: memref<128x128xbf16, #tpu.memory_space<vmem>>, %arg7: memref<1x128xf32, #tpu.memory_space<vmem>>, %arg8: memref<8x128xf32, #tpu.memory_space<vmem>>) attributes {dimension_semantics = [#tpu.dimension_semantics<parallel>], iteration_bounds = array<i64: 1>, scalar_prefetch = 0 : i64, scratch_operands = 0 : i64, tpu.core_type = #tpu.core_type<tc>, window_params = [{transform_indices = @transform_0, window_bounds = array<i64: 8, 128>}, {pipeline_mode = #tpu.pipeline_mode<synchronous>, transform_indices = @transform_1, window_bounds = array<i64: 128, 128>}, {pipeline_mode = #tpu.pipeline_mode<synchronous>, transform_indices = @transform_2, window_bounds = array<i64: 1, 128>}, {pipeline_mode = #tpu.pipeline_mode<synchronous>, transform_indices = @transform_3, window_bounds = array<i64: 128, 128>}, {pipeline_mode = #tpu.pipeline_mode<synchronous>, transform_indices = @transform_4, window_bounds = array<i64: 1, 128>}, {pipeline_mode = #tpu.pipeline_mode<synchronous>, transform_indices = @transform_5, window_bounds = array<i64: 128, 128>}, {pipeline_mode = #tpu.pipeline_mode<synchronous>, transform_indices = @transform_6, window_bounds = array<i64: 1, 128>}, {transform_indices = @transform_7, window_bounds = array<i64: 8, 128>}]} {
    %c0 = arith.constant 0 : index
    %c0_0 = arith.constant 0 : index
    %0 = vector.load %arg1[%c0, %c0_0] : memref<8x128xf32, #tpu.memory_space<vmem>>, vector<8x128xf32>
    %1 = arith.truncf %0 : vector<8x128xf32> to vector<8x128xbf16>
    %c0_1 = arith.constant 0 : index
    %c0_2 = arith.constant 0 : index
    %2 = vector.load %arg2[%c0_1, %c0_2] : memref<128x128xbf16, #tpu.memory_space<vmem>>, vector<128x128xbf16>
    %cst = arith.constant dense<0.000000e+00> : vector<8x128xf32>
    %3 = tpu.matmul %1, %2, %cst {dimension_numbers = #tpu.dot_dimension_numbers<[1], [0], [0], [1], [0, 0, 1, 1], [], []>} : vector<8x128xbf16>, vector<128x128xbf16>, vector<8x128xf32> -> vector<8x128xf32>
    %c0_3 = arith.constant 0 : index
    %c0_4 = arith.constant 0 : index
    %4 = vector.load %arg3[%c0_3, %c0_4] : memref<1x128xf32, #tpu.memory_space<vmem>>, vector<1x128xf32>
    %5 = vector.broadcast %4 : vector<1x128xf32> to vector<8x128xf32>
    %6 = arith.addf %3, %5 : vector<8x128xf32>
    %cst_5 = arith.constant 0.000000e+00 : f32
    %7 = vector.broadcast %cst_5 : f32 to vector<8x128xf32>
    %8 = arith.maximumf %6, %7 : vector<8x128xf32>
    %9 = arith.truncf %8 : vector<8x128xf32> to vector<8x128xbf16>
    %c0_6 = arith.constant 0 : index
    %c0_7 = arith.constant 0 : index
    %10 = vector.load %arg4[%c0_6, %c0_7] : memref<128x128xbf16, #tpu.memory_space<vmem>>, vector<128x128xbf16>
    %cst_8 = arith.constant dense<0.000000e+00> : vector<8x128xf32>
    %11 = tpu.matmul %9, %10, %cst_8 {dimension_numbers = #tpu.dot_dimension_numbers<[1], [0], [0], [1], [0, 0, 1, 1], [], []>} : vector<8x128xbf16>, vector<128x128xbf16>, vector<8x128xf32> -> vector<8x128xf32>
    %c0_9 = arith.constant 0 : index
    %c0_10 = arith.constant 0 : index
    %12 = vector.load %arg5[%c0_9, %c0_10] : memref<1x128xf32, #tpu.memory_space<vmem>>, vector<1x128xf32>
    %13 = vector.broadcast %12 : vector<1x128xf32> to vector<8x128xf32>
    %14 = arith.addf %11, %13 : vector<8x128xf32>
    %cst_11 = arith.constant 0.000000e+00 : f32
    %15 = vector.broadcast %cst_11 : f32 to vector<8x128xf32>
    %16 = arith.maximumf %14, %15 : vector<8x128xf32>
    %17 = arith.truncf %16 : vector<8x128xf32> to vector<8x128xbf16>
    %c0_12 = arith.constant 0 : index
    %c0_13 = arith.constant 0 : index
    %18 = vector.load %arg6[%c0_12, %c0_13] : memref<128x128xbf16, #tpu.memory_space<vmem>>, vector<128x128xbf16>
    %cst_14 = arith.constant dense<0.000000e+00> : vector<8x128xf32>
    %19 = tpu.matmul %17, %18, %cst_14 {dimension_numbers = #tpu.dot_dimension_numbers<[1], [0], [0], [1], [0, 0, 1, 1], [], []>} : vector<8x128xbf16>, vector<128x128xbf16>, vector<8x128xf32> -> vector<8x128xf32>
    %c0_15 = arith.constant 0 : index
    %c0_16 = arith.constant 0 : index
    %20 = vector.load %arg7[%c0_15, %c0_16] : memref<1x128xf32, #tpu.memory_space<vmem>>, vector<1x128xf32>
    %21 = vector.broadcast %20 : vector<1x128xf32> to vector<8x128xf32>
    %22 = arith.addf %19, %21 : vector<8x128xf32>
    %c0_17 = arith.constant 0 : index
    %c0_18 = arith.constant 0 : index
    %23 = vector.load %arg8[%c0_17, %c0_18] : memref<8x128xf32, #tpu.memory_space<vmem>>, vector<8x128xf32>
    tpu.vector_store %arg8[%c0_17, %c0_18], %22 {strides = array<i32>} : memref<8x128xf32, #tpu.memory_space<vmem>>, vector<8x128xf32>,
    return
  }
  func.func @transform_0(%arg0: i32) -> (i32, i32) {
    %c0_i32 = arith.constant 0 : i32
    %c0_i32_0 = arith.constant 0 : i32
    return %arg0, %c0_i32 : i32, i32
  }
  func.func @transform_1(%arg0: i32) -> (i32, i32) {
    %c0_i32 = arith.constant 0 : i32
    %c0_i32_0 = arith.constant 0 : i32
    %c0_i32_1 = arith.constant 0 : i32
    return %c0_i32, %c0_i32_0 : i32, i32
  }
  func.func @transform_2(%arg0: i32) -> (i32, i32) {
    %c0_i32 = arith.constant 0 : i32
    %c0_i32_0 = arith.constant 0 : i32
    %c0_i32_1 = arith.constant 0 : i32
    return %c0_i32, %c0_i32_0 : i32, i32
  }
  func.func @transform_3(%arg0: i32) -> (i32, i32) {
    %c0_i32 = arith.constant 0 : i32
    %c0_i32_0 = arith.constant 0 : i32
    %c0_i32_1 = arith.constant 0 : i32
    return %c0_i32, %c0_i32_0 : i32, i32
  }
  func.func @transform_4(%arg0: i32) -> (i32, i32) {
    %c0_i32 = arith.constant 0 : i32
    %c0_i32_0 = arith.constant 0 : i32
    %c0_i32_1 = arith.constant 0 : i32
    return %c0_i32, %c0_i32_0 : i32, i32
  }
  func.func @transform_5(%arg0: i32) -> (i32, i32) {
    %c0_i32 = arith.constant 0 : i32
    %c0_i32_0 = arith.constant 0 : i32
    %c0_i32_1 = arith.constant 0 : i32
    return %c0_i32, %c0_i32_0 : i32, i32
  }
  func.func @transform_6(%arg0: i32) -> (i32, i32) {
    %c0_i32 = arith.constant 0 : i32
    %c0_i32_0 = arith.constant 0 : i32
    %c0_i32_1 = arith.constant 0 : i32
    return %c0_i32, %c0_i32_0 : i32, i32
  }
  func.func @transform_7(%arg0: i32) -> (i32, i32) {
    %c0_i32 = arith.constant 0 : i32
    %c0_i32_0 = arith.constant 0 : i32
    return %arg0, %c0_i32 : i32, i32
  }
}

</mosaic_0001>

<bundles_post_ra>
// kernel: critic_q1_q2.1
= control target key start
LH: loop header
LB: loop body
LE: loop exit
PB: predicated region body
PF: predicated region fallthrough
CT: control target
= control target key end

     0   :  { %12 = vsyncpa [#allocation3], 0  ;;  %s773_s0 = inlined_call_operand.vmem [shape: f32[8,128], index: 0, kind: input, shape index: {}]   ;;  %s774_s1 = inlined_call_operand.hbm [shape: bf16[128,128], index: 1, kind: input, shape index: {}]   ;;  %s775_s2 = inlined_call_operand.vmem [shape: f32[1,128], index: 2, kind: input, shape index: {}]   ;;  %s776_s3 = inlined_call_operand.hbm [shape: bf16[128,128], index: 3, kind: input, shape index: {}]   ;;  %s777_s4 = inlined_call_operand.vmem [shape: f32[1,128], index: 4, kind: input, shape index: {}]   ;;  %s778_s5 = inlined_call_operand.hbm [shape: bf16[128,128], index: 5, kind: input, shape index: {}]   ;;  %s779_s6 = inlined_call_operand.vmem [shape: f32[1,128], index: 6, kind: input, shape index: {}]   ;;  %s780_s7 = inlined_call_operand.vmem [shape: f32[8,128], index: 7, kind: output, shape index: {}]  }
   0x1   :  { %13 = vsyncpa [#allocation5], 0  ;;  %s629_s24 = smov [#allocation4]   ;;  %s630_s26 = smov [#allocation2]  }
   0x2   :  { %s35_s25 = sshll.u32 %s629_s24, 4  ;;  %s21_s27 = sshll.u32 %s630_s26, 4  ;;  %s36_s25 = int_to_ptr.vmem [resolvable:$true] %s35_s25  ;;  %s676_s27 = int_to_ptr.vmem [resolvable:$true] %s21_s27 }
   0x3   :  { %s559_s30 = scalar_lea.hbm %s776_s3, 1024 }
   0x4   :  { %p560_p0 = scmp.ne.s32.totalorder %s776_s3, %s559_s30  ;;  %p563_p1 = scmp.lt.u32.totalorder %s559_s30, %s776_s3 }
   0x6   :  { %p565_p2 = pnand %p563_p1, %p560_p0 }
   0x8   :  { %568 = shalt.err (!%p565_p2)
}
   0x9   :  { %s569_s12 = scalar_lea.vmem %s36_s25, 1024  ;;  %p574_p4 = scmp.lt.s32.totalorder %s36_s25, %s36_s25 }
   0xa   :  { %p570_p3 = scmp.ne.s32.totalorder %s36_s25, %s569_s12  ;;  %p575_p5 = scmp.lt.s32.totalorder %s569_s12, %s569_s12 }
   0xc   :  { %p576_p6 = por %p575_p5, %p574_p4 }
   0xe   :  { %p577_p7 = pnand %p576_p6, %p570_p3 }
  0x10   :  { %580 = shalt.err (!%p577_p7)
}
  0x11   :  { %s631_s13 = smov 64   ;;  %s632_s14 = smov 4  }
  0x12   :  { %41 = dma.hbm_to_vmem [thread:$0]  %s776_s3, 1024, %s36_s25, [#allocation5], %s631_s13, %s631_s13, %s632_s14  }
  0x13   :  { %s581_s19 = scalar_lea.hbm %s774_s1, 1024 }
  0x14   :  { %p582_p8 = scmp.ne.s32.totalorder %s774_s1, %s581_s19  ;;  %p585_p9 = scmp.lt.u32.totalorder %s581_s19, %s774_s1 }
  0x16   :  { %p587_p10 = pnand %p585_p9, %p582_p8 }
  0x18   :  { %590 = shalt.err (!%p587_p10)
}
  0x19   :  { %s591_s24 = scalar_lea.vmem %s676_s27, 1024  ;;  %p596_p12 = scmp.lt.s32.totalorder %s676_s27, %s676_s27 }
  0x1a   :  { %p592_p11 = scmp.ne.s32.totalorder %s676_s27, %s591_s24  ;;  %p597_p13 = scmp.lt.s32.totalorder %s591_s24, %s591_s24 }
  0x1c   :  { %p598_p0 = por %p597_p13, %p596_p12 }
  0x1e   :  { %p599_p1 = pnand %p598_p0, %p592_p11 }
  0x20   :  { %602 = shalt.err (!%p599_p1)
}
  0x21   :  { %27 = dma.hbm_to_vmem [thread:$0]  %s774_s1, 1024, %s676_s27, [#allocation3], %s631_s13, %s631_s13, %s632_s14  }
  0x22   :  { %s633_s26 = smov [#allocation6]   ;;  %s603_s8 = scalar_lea.hbm %s778_s5, 1024 }
  0x23   :  { %s49_s28 = sshll.u32 %s633_s26, 4  ;;  %p604_p2 = scmp.ne.s32.totalorder %s778_s5, %s603_s8  ;;  %s50_s28 = int_to_ptr.vmem [resolvable:$true] %s49_s28 }
  0x24   :  { %p607_p3 = scmp.lt.u32.totalorder %s603_s8, %s778_s5 }
  0x26   :  { %p609_p4 = pnand %p607_p3, %p604_p2 }
  0x28   :  { %612 = shalt.err (!%p609_p4)
}
  0x29   :  { %s613_s15 = scalar_lea.vmem %s50_s28, 1024  ;;  %p618_p6 = scmp.lt.s32.totalorder %s50_s28, %s50_s28 }
  0x2a   :  { %p614_p5 = scmp.ne.s32.totalorder %s50_s28, %s613_s15  ;;  %p619_p7 = scmp.lt.s32.totalorder %s613_s15, %s613_s15 }
  0x2c   :  { %p620_p8 = por %p619_p7, %p618_p6 }
  0x2e   :  { %p621_p9 = pnand %p620_p8, %p614_p5 }
  0x30   :  { %624 = shalt.err (!%p621_p9)
}
  0x31   :  { %55 = dma.hbm_to_vmem [thread:$0]  %s778_s5, 1024, %s50_s28, [#allocation5], %s631_s13, %s631_s13, %s632_s14  }
  0x32   :  { %625 = dma.done.wait [#allocation3], 1024  }
  0x33   :  { %626 = vsyncadd [#allocation3], 4294966272 }
  0x34   :  { %627 = dma.done.wait [#allocation5], 2048  }
  0x35   :  { %628 = vsyncadd [#allocation5], 4294965248  ;;  %v634_v0 = vmov 0.0   ;;  %vm635_vm0 = vmmov 0   ;;  %v535_v1 = vld [vmem:[#allocation2] sm:$0xff]   ;;  %v536_v2 = vld [vmem:[#allocation2 + $0x8] sm:$0xff]  }
  0x36   :  { %468 = vmatprep.subr.bf16.mxu0 %v634_v0  ;;  %484 = vmatprep.mubr.msk.bf16.mxu0 %vm635_vm0, %v634_v0  ;;  %v537_v3 = vld [vmem:[#allocation2 + $0x10] sm:$0xff]   ;;  %v543_v4 = vld [vmem:[#allocation4] sm:$0xff]   ;;  %v538_v5 = vld [vmem:[#allocation2 + $0x18] sm:$0xff]  }
  0x37   :  { %488 = vmatprep.subr.bf16.mxu1 %v634_v0  ;;  %504 = vmatprep.mubr.msk.bf16.mxu1 %vm635_vm0, %v634_v0  ;;  %v544_v6 = vld [vmem:[#allocation4 + $0x8] sm:$0xff]   ;;  %v539_v7 = vld [vmem:[#allocation2 + $0x20] sm:$0xff]   ;;  %v545_v8 = vld [vmem:[#allocation4 + $0x10] sm:$0xff]  }
  0x38   :  { %469 = vmatpush3.bf16.msra.mxu0 %v535_v1  ;;  %489 = vmatpush3.bf16.msra.mxu1 %v543_v4  ;;  %v540_v9 = vld [vmem:[#allocation2 + $0x28] sm:$0xff]   ;;  %v546_v10 = vld [vmem:[#allocation4 + $0x18] sm:$0xff]   ;;  %v541_v11 = vld [vmem:[#allocation2 + $0x30] sm:$0xff]  }
  0x39   :  { %470 = vmatprep.subr.bf16.mxu0 %v634_v0  ;;  %490 = vmatprep.subr.bf16.mxu1 %v634_v0  ;;  %v547_v12 = vld [vmem:[#allocation4 + $0x20] sm:$0xff]   ;;  %v542_v13 = vld [vmem:[#allocation2 + $0x38] sm:$0xff]   ;;  %v548_v15 = vld [vmem:[#allocation4 + $0x28] sm:$0xff]  }
  0x3a   :  { %v68_v14 = vld [vmem:[%s773_s0] sm:$0xff]  ;;  %v549_v17 = vld [vmem:[#allocation4 + $0x30] sm:$0xff]   ;;  %v550_v18 = vld [vmem:[#allocation4 + $0x38] sm:$0xff]  }
  0x3b   :  { %v69_v16 = vpack.c.bf16 %v68_v14, %v68_v14  ;;  %v551_v19 = vld [vmem:[#allocation6] sm:$0xff]   ;;  %v552_v20 = vld [vmem:[#allocation6 + $0x8] sm:$0xff]   ;;  %v553_v21 = vld [vmem:[#allocation6 + $0x10] sm:$0xff]  }
  0x3c   :  { %471 = vmatpush3.bf16.msra.mxu0 %v536_v2  ;;  %491 = vmatpush3.bf16.msra.mxu1 %v544_v6  ;;  %v554_v22 = vld [vmem:[#allocation6 + $0x18] sm:$0xff]   ;;  %v555_v23 = vld [vmem:[#allocation6 + $0x20] sm:$0xff]   ;;  %v556_v24 = vld [vmem:[#allocation6 + $0x28] sm:$0xff]  }
  0x3d   :  { %472 = vmatprep.subr.bf16.mxu0 %v634_v0  ;;  %492 = vmatprep.subr.bf16.mxu1 %v634_v0  ;;  %v414_v25 = vld [vmem:[%s775_s2] ss:$0 sm:$0xff]  ;;  %v557_v33 = vld [vmem:[#allocation6 + $0x30] sm:$0xff]   ;;  %v558_v34 = vld [vmem:[#allocation6 + $0x38] sm:$0xff]  }
  0x3e   :  { %v423_v35 = vld [vmem:[%s777_s4] ss:$0 sm:$0xff] }
  0x3f   :  { %v432_v43 = vld [vmem:[%s779_s6] ss:$0 sm:$0xff] }
  0x40   :  { %473 = vmatpush3.bf16.msra.mxu0 %v537_v3  ;;  %493 = vmatpush3.bf16.msra.mxu1 %v545_v8 }
  0x41   :  { %474 = vmatprep.subr.bf16.mxu0 %v634_v0  ;;  %494 = vmatprep.subr.bf16.mxu1 %v634_v0 }
  0x44   :  { %475 = vmatpush3.bf16.msra.mxu0 %v538_v5  ;;  %495 = vmatpush3.bf16.msra.mxu1 %v546_v10 }
  0x45   :  { %476 = vmatprep.subr.bf16.mxu0 %v634_v0  ;;  %496 = vmatprep.subr.bf16.mxu1 %v634_v0 }
  0x48   :  { %477 = vmatpush3.bf16.msra.mxu0 %v539_v7  ;;  %497 = vmatpush3.bf16.msra.mxu1 %v547_v12 }
  0x49   :  { %478 = vmatprep.subr.bf16.mxu0 %v634_v0  ;;  %498 = vmatprep.subr.bf16.mxu1 %v634_v0 }
  0x4c   :  { %479 = vmatpush3.bf16.msra.mxu0 %v540_v9  ;;  %499 = vmatpush3.bf16.msra.mxu1 %v548_v15 }
  0x4d   :  { %480 = vmatprep.subr.bf16.mxu0 %v634_v0  ;;  %500 = vmatprep.subr.bf16.mxu1 %v634_v0 }
  0x50   :  { %481 = vmatpush3.bf16.msra.mxu0 %v541_v11  ;;  %501 = vmatpush3.bf16.msra.mxu1 %v549_v17 }
  0x51   :  { %482 = vmatprep.subr.bf16.mxu0 %v634_v0  ;;  %502 = vmatprep.subr.bf16.mxu1 %v634_v0 }
  0x54   :  { %483 = vmatpush3.bf16.msra.mxu0 %v542_v13  ;;  %503 = vmatpush3.bf16.msra.mxu1 %v550_v18 }
  0x55   :  { %508 = vmatprep.subr.bf16.mxu0 %v634_v0 }
  0x57   :  { %485 = vmatmul.mubr.bf16.vlgmr.msra.gmra.mrb[0].mxu0 %v69_v16 }
  0x58   :  { %524 = vmatprep.mubr.msk.bf16.mxu0 %vm635_vm0, %v634_v0  ;;  %509 = vmatpush3.bf16.msra.mxu0 %v551_v19 }
  0x59   :  { %510 = vmatprep.subr.bf16.mxu0 %v634_v0 }
  0x5c   :  { %511 = vmatpush3.bf16.msra.mxu0 %v552_v20 }
  0x5d   :  { %512 = vmatprep.subr.bf16.mxu0 %v634_v0 }
  0x60   :  { %513 = vmatpush3.bf16.msra.mxu0 %v553_v21 }
  0x61   :  { %514 = vmatprep.subr.bf16.mxu0 %v634_v0 }
  0x64   :  { %515 = vmatpush3.bf16.msra.mxu0 %v554_v22 }
  0x65   :  { %516 = vmatprep.subr.bf16.mxu0 %v634_v0 }
  0x68   :  { %517 = vmatpush3.bf16.msra.mxu0 %v555_v23 }
  0x69   :  { %518 = vmatprep.subr.bf16.mxu0 %v634_v0 }
  0x6c   :  { %519 = vmatpush3.bf16.msra.mxu0 %v556_v24 }
  0x6d   :  { %520 = vmatprep.subr.bf16.mxu0 %v634_v0 }
  0x70   :  { %521 = vmatpush3.bf16.msra.mxu0 %v557_v33 }
  0x71   :  { %522 = vmatprep.subr.bf16.mxu0 %v634_v0 }
  0x74   :  { %523 = vmatpush3.bf16.msra.mxu0 %v558_v34 }
 0x12a   :  { %v175_v26 = vpop.f32.mrb[0].mxu0 }
 0x12b   :  { %v176_v27 = vadd.f32 %v414_v25, %v175_v26  ;;  %v486_v28 = vpop.f32.mrb[1].mxu0 }
 0x12c   :  { %v178_v29 = vpop.f32.mrb[2].mxu0 }
 0x12d   :  { %v181_v30 = vmax.f32 %v176_v27, 0.0  ;;  %v487_v31 = vpop.f32.mrb[3].mxu0 }
 0x12f   :  { %v182_v32 = vpack.c.bf16 %v181_v30, %v181_v30 }
 0x131   :  { %505 = vmatmul.mubr.bf16.vlgmr.msra.gmra.mrb[0].mxu1 %v182_v32 }
 0x204   :  { %v288_v36 = vpop.f32.mrb[0].mxu1 }
 0x205   :  { %v289_v37 = vadd.f32 %v423_v35, %v288_v36  ;;  %v506_v38 = vpop.f32.mrb[1].mxu1 }
 0x206   :  { %v291_v39 = vpop.f32.mrb[2].mxu1 }
 0x207   :  { %v294_v40 = vmax.f32 %v289_v37, 0.0  ;;  %v507_v41 = vpop.f32.mrb[3].mxu1 }
 0x209   :  { %v295_v42 = vpack.c.bf16 %v294_v40, %v294_v40 }
 0x20b   :  { %525 = vmatmul.mubr.bf16.vlgmr.msra.gmra.mrb[4].mxu0 %v295_v42 }
 0x2de   :  { %v401_v44 = vpop.f32.mrb[4].mxu0 }
 0x2df   :  { %v402_v45 = vadd.f32 %v432_v43, %v401_v44  ;;  %v526_v46 = vpop.f32.mrb[5].mxu0 }
 0x2e0   :  { %v404_v47 = vpop.f32.mrb[6].mxu0 }
 0x2e1   :  { %407 = vst [vmem:[%s780_s7] sm:$0xff] %v402_v45  ;;  %v527_v48 = vpop.f32.mrb[7].mxu0 }
 0x2e2   :  { %412 = vsyncpa [#allocation3], 1 }
 0x2e3   :  { %413 = vsyncpa [#allocation5], 1 }

</bundles_post_ra>
